<compile_context>
chip_gen: v7x
topology: tpu7x:2x2x1
jax: 0.10.0
libtpu: 0.0.40
codegen_flags: <defaults>
</compile_context>

<pallas_src>
import math
from functools import partial

import jax
import jax.numpy as jnp
from jax import lax
from jax.experimental import pallas as pl
from jax.experimental.pallas import tpu as pltpu


def _pow2_fold(n_rows, width, max_lanes):
    """Largest power-of-two f with n_rows % f == 0 and width * f <= max_lanes."""
    f = 1
    while (width * f * 2) <= max_lanes and (n_rows % (f * 2)) == 0:
        f *= 2
    return f


def _pick_row_tile(n_rows, n_cols, itemsize, target_bytes, align=64):
    """Row-tile size: ~target_bytes per (lane-padded) VMEM buffer, aligned, capped at n_rows."""
    padded_cols = ((n_cols + 127) // 128) * 128
    row_bytes = padded_cols * max(int(itemsize), 4)  # conservative: 32-bit vreg lanes
    t = (target_bytes // row_bytes) // align * align
    t = max(align, int(t))
    return n_rows if n_rows <= t else t


# --------------------------- pass 1: column-sum of (folded) x ---------------------------
def _colsum_kernel(xf_ref, psum_ref, *, n_rows, tile_m, tiles_per_split, need_mask):
    s = pl.program_id(0)   # parallel split (shards across TensorCores on v7x)
    i = pl.program_id(1)   # arbitrary reduction axis

    @pl.when(i == 0)
    def _init():
        psum_ref[...] = jnp.zeros_like(psum_ref)

    x = xf_ref[...].astype(jnp.float32)  # (tile_m, cols)
    if need_mask:
        g0 = (s * tiles_per_split + i) * tile_m
        ridx = g0 + lax.broadcasted_iota(jnp.int32, x.shape, 0)
        x = jnp.where(ridx < n_rows, x, 0.0)
    # (1, cols) partial, broadcast-accumulated over the 8 sublanes of the padded block
    # (every sublane of this split's output block ends up holding the same column sum).
    psum_ref[...] += jnp.sum(x, axis=0, keepdims=True)


# --------------------------- pass 2: broadcast-store the result row ---------------------------
def _broadcast_kernel(row_ref, o_ref):
    o_ref[...] = jnp.broadcast_to(row_ref[...], o_ref.shape).astype(o_ref.dtype)


def basic_mlp_forward(x, weight, bias=None, d_vec=None):
    """Pallas TPU implementation of BasicMLP.forward."""
    # TODO(synk): d_vec and the module's `coeff` Parameter are unused by forward; ignored here.
    n_nodes, in_features = x.shape
    out_features = weight.shape[1]
    out_dtype = x.dtype
    itemsize_in = jnp.dtype(x.dtype).itemsize
    itemsize_out = jnp.dtype(out_dtype).itemsize

    # ---------------- pass 1: lane-dense folded column-sum of x ----------------
    kf = _pow2_fold(n_nodes, in_features, max_lanes=512) if in_features <= 512 else 1
    cols_x = in_features * kf
    n_rows_x = n_nodes // kf
    xf = x.reshape(n_rows_x, cols_x)  # contiguous reshape, free

    tm_x = _pick_row_tile(n_rows_x, cols_x, itemsize_in, target_bytes=2 << 20)
    n_tiles = pl.cdiv(n_rows_x, tm_x)
    n_splits = 2 if (n_tiles >= 2 and n_tiles % 2 == 0) else 1   # v7x: 2 TCs on the reduce
    tiles_per_split = n_tiles // n_splits
    need_mask = (n_rows_x % tm_x) != 0

    partials = pl.pallas_call(
        partial(_colsum_kernel, n_rows=n_rows_x, tile_m=tm_x,
                tiles_per_split=tiles_per_split, need_mask=need_mask),
        # sublane-padded: each split owns an (8, cols_x) block (all 8 rows identical).
        out_shape=jax.ShapeDtypeStruct((n_splits * 8, cols_x), jnp.float32),
        grid_spec=pltpu.PrefetchScalarGridSpec(
            num_scalar_prefetch=0,
            grid=(n_splits, tiles_per_split),
            in_specs=[pl.BlockSpec((tm_x, cols_x),
                                   lambda s, i: (s * tiles_per_split + i, 0))],
            out_specs=pl.BlockSpec((8, cols_x), lambda s, i: (s, 0)),
        ),
        compiler_params=pltpu.CompilerParams(
            dimension_semantics=("parallel", "arbitrary")),
        cost_estimate=pl.CostEstimate(
            flops=n_rows_x * cols_x,
            transcendentals=0,
            bytes_accessed=itemsize_in * n_rows_x * cols_x + 4 * n_splits * 8 * cols_x,
        ),
    )(xf)

    # ---------------- tiny epilogue in plain JAX (hoisted out of the kernel) ----------------
    split_sums = partials[0::8, :]                                   # (n_splits, cols_x)
    xsum_wide = jnp.sum(split_sums, axis=0)                          # (cols_x,)
    xsum = xsum_wide.reshape(kf, in_features).sum(axis=0, keepdims=True)  # (1, in)
    row = jnp.dot(xsum, weight.astype(jnp.float32),
                  preferred_element_type=jnp.float32)                # (1, out)
    if bias is not None:
        row = row + bias.reshape(1, out_features).astype(jnp.float32)

    # ---------------- pass 2: lane-dense folded broadcast store ----------------
    fo = _pow2_fold(n_nodes, out_features, max_lanes=1024) if out_features <= 1024 else 1
    out_wide = out_features * fo
    n_rows_o = n_nodes // fo
    row_wide = jnp.tile(row, (1, fo)).astype(out_dtype)              # (1, out_wide), tiny XLA op

    tm_f = _pick_row_tile(n_rows_o, out_wide, itemsize_out, target_bytes=4 << 20)
    grid_f = pl.cdiv(n_rows_o, tm_f)

    folded = pl.pallas_call(
        _broadcast_kernel,
        out_shape=jax.ShapeDtypeStruct((n_rows_o, out_wide), out_dtype),
        grid_spec=pltpu.PrefetchScalarGridSpec(
            num_scalar_prefetch=0,
            grid=(grid_f,),
            in_specs=[pl.BlockSpec((1, out_wide), lambda i: (0, 0))],
            out_specs=pl.BlockSpec((tm_f, out_wide), lambda i: (i, 0)),
        ),
        compiler_params=pltpu.CompilerParams(dimension_semantics=("parallel",)),
        cost_estimate=pl.CostEstimate(
            flops=0,
            transcendentals=0,
            bytes_accessed=itemsize_out * (out_wide + n_rows_o * out_wide),
        ),
    )(row_wide)

    # Contiguous reshape back to (N, out): folded row r columns [j*out:(j+1)*out] are
    # output rows r*fo + j, each equal to `row`.
    return folded.reshape(n_nodes, out_features)


def reference_forward(x, weight, bias):
    support = x.astype(jnp.float32) @ weight.astype(jnp.float32)
    n = x.shape[0]
    out = jnp.ones((n, 1), jnp.float32) @ (jnp.ones((1, n), jnp.float32) @ support)
    if bias is not None:
        out = out + bias.astype(jnp.float32)
    return out


if __name__ == "__main__":
    key = jax.random.PRNGKey(0)

    def make_case(key, n_nodes, in_features, out_features, with_bias):
        kx, kw, kb = jax.random.split(key, 3)
        stdv = 1.0 / math.sqrt(out_features)  # matches reset_parameters()
        weight = jax.random.uniform(kw, (in_features, out_features),
                                    minval=-stdv, maxval=stdv, dtype=jnp.float32)
        bias = (jax.random.uniform(kb, (out_features,), minval=-stdv, maxval=stdv,
                                   dtype=jnp.float32) if with_bias else None)
        x = jax.random.normal(kx, (n_nodes, in_features), dtype=jnp.float32)
        d_vec = jnp.zeros((n_nodes,), dtype=jnp.float32)  # unused by forward
        return x, weight, bias, d_vec

    k1, k2 = jax.random.split(key)

    # Case 1: small shapes consistent with the module (n_nodes=8, in=4, out=32), bias=True.
    x, w, b, d = make_case(k1, 8, 4, 32, True)
    out = jax.block_until_ready(basic_mlp_forward(x, w, b, d))
    ref = reference_forward(x, w, b)
    assert out.shape == (8, 32)
    assert jnp.allclose(out.astype(jnp.float32), ref, atol=1e-5, rtol=1e-5), "case1 mismatch"

    # Case 2: non-power-of-two node count, bias=None path.
    x2, w2, b2, d2 = make_case(k2, 200, 4, 32, False)
    out2 = jax.block_until_ready(basic_mlp_forward(x2, w2, b2, d2))
    ref2 = reference_forward(x2, w2, b2)
    assert out2.shape == (200, 32)
    assert jnp.allclose(out2.astype(jnp.float32), ref2, atol=1e-4, rtol=1e-5), "case2 mismatch"

    print("KERNEL_OK")
</pallas_src>

<mosaic_0001>
module attributes {stable_mosaic.version = 11 : i64} {
  func.func @_colsum_kernel(%arg0: i32, %arg1: i32, %arg2: memref<1x32xf32, #tpu.memory_space<vmem>>, %arg3: memref<8x32xf32, #tpu.memory_space<vmem>>) attributes {dimension_semantics = [#tpu.dimension_semantics<parallel>, #tpu.dimension_semantics<arbitrary>], iteration_bounds = array<i64: 1, 1>, scalar_prefetch = 0 : i64, scratch_operands = 0 : i64, tpu.core_type = #tpu.core_type<tc>, window_params = [{transform_indices = @transform_0, window_bounds = array<i64: 1, 32>}, {transform_indices = @transform_1, window_bounds = array<i64: 8, 32>}]} {
    %c0_i32 = arith.constant 0 : i32
    %0 = arith.cmpi eq, %arg1, %c0_i32 : i32
    %1 = arith.extui %0 : i1 to i32
    %c0_i32_0 = arith.constant 0 : i32
    %2 = arith.cmpi ne, %1, %c0_i32_0 : i32
    scf.if %2 {
      %cst_6 = arith.constant 0.000000e+00 : f32
      %10 = vector.broadcast %cst_6 : f32 to vector<8x32xf32>
      %c0_7 = arith.constant 0 : index
      %c0_8 = arith.constant 0 : index
      %11 = vector.load %arg3[%c0_7, %c0_8] : memref<8x32xf32, #tpu.memory_space<vmem>>, vector<8x32xf32>
      tpu.vector_store %arg3[%c0_7, %c0_8], %10 {strides = array<i32>} : memref<8x32xf32, #tpu.memory_space<vmem>>, vector<8x32xf32>,
    } else {
    }
    %c0 = arith.constant 0 : index
    %c0_1 = arith.constant 0 : index
    %3 = vector.load %arg2[%c0, %c0_1] : memref<1x32xf32, #tpu.memory_space<vmem>>, vector<1x32xf32>
    %c0_2 = arith.constant 0 : index
    %c0_3 = arith.constant 0 : index
    %4 = vector.load %arg3[%c0_2, %c0_3] : memref<8x32xf32, #tpu.memory_space<vmem>>, vector<8x32xf32>
    %cst = arith.constant dense<0.000000e+00> : vector<32xf32>
    %5 = vector.multi_reduction <add>, %3, %cst [0] : vector<1x32xf32> to vector<32xf32>
    %6 = vector.shape_cast %5 : vector<32xf32> to vector<1x32xf32>
    %7 = vector.broadcast %6 : vector<1x32xf32> to vector<8x32xf32>
    %8 = arith.addf %4, %7 : vector<8x32xf32>
    %c0_4 = arith.constant 0 : index
    %c0_5 = arith.constant 0 : index
    %9 = vector.load %arg3[%c0_4, %c0_5] : memref<8x32xf32, #tpu.memory_space<vmem>>, vector<8x32xf32>
    tpu.vector_store %arg3[%c0_4, %c0_5], %8 {strides = array<i32>} : memref<8x32xf32, #tpu.memory_space<vmem>>, vector<8x32xf32>,
    return
  }
  func.func @transform_0(%arg0: i32, %arg1: i32) -> (i32, i32) {
    %c1_i32 = arith.constant 1 : i32
    %0 = arith.muli %arg0, %c1_i32 : i32
    %1 = arith.addi %0, %arg1 : i32
    %c0_i32 = arith.constant 0 : i32
    %c0_i32_0 = arith.constant 0 : i32
    return %1, %c0_i32 : i32, i32
  }
  func.func @transform_1(%arg0: i32, %arg1: i32) -> (i32, i32) {
    %c0_i32 = arith.constant 0 : i32
    %c0_i32_0 = arith.constant 0 : i32
    return %arg0, %c0_i32 : i32, i32
  }
}

</mosaic_0001>

<bundles_post_ra>
// kernel: tpu_custom_call.1
= control target key start
LH: loop header
LB: loop body
LE: loop exit
PB: predicated region body
PF: predicated region fallthrough
CT: control target
= control target key end

     0   :  { %6 = vsyncpa [#allocation3], 0  ;;  %s147_s0 = inlined_call_operand.hbm [shape: f32[1,32], index: 0, kind: input, shape index: {}]   ;;  %s148_s1 = inlined_call_operand.hbm [shape: f32[8,32], index: 1, kind: output, shape index: {}]  }
   0x1   :  { %7 = vsyncpa [#allocation4], 0  ;;  %s110_s6 = smov [#allocation2]   ;;  %s62_s10 = scalar_lea.hbm %s147_s0, 16 }
   0x2   :  { %s17_s7 = sshll.u32 %s110_s6, 4  ;;  %p63_p0 = scmp.ne.s32.totalorder %s147_s0, %s62_s10  ;;  %s18_s7 = int_to_ptr.vmem [resolvable:$true] %s17_s7 }
   0x3   :  { %p66_p1 = scmp.lt.u32.totalorder %s62_s10, %s147_s0 }
   0x5   :  { %p68_p2 = pnand %p66_p1, %p63_p0 }
   0x7   :  { %71 = shalt.err (!%p68_p2)
}
   0x8   :  { %s72_s15 = scalar_lea.vmem %s18_s7, 16  ;;  %s76_s16 = scalar_lea.vmem %s18_s7, 32 }
   0x9   :  { %p73_p3 = scmp.ne.s32.totalorder %s18_s7, %s72_s15  ;;  %p77_p4 = scmp.lt.s32.totalorder %s18_s7, %s18_s7 }
   0xa   :  { %p78_p5 = scmp.lt.s32.totalorder %s76_s16, %s72_s15 }
   0xc   :  { %p79_p6 = por %p78_p5, %p77_p4 }
   0xe   :  { %p80_p7 = pnand %p79_p6, %p73_p3 }
  0x10   :  { %83 = shalt.err (!%p80_p7)
}
  0x11   :  { %20 = dma.hbm_to_vmem [thread:$0]  %s147_s0, 16, %s18_s7, [#allocation3]  }
  0x12   :  { %106 = dma.done.wait [#allocation3], 16  }
  0x13   :  { %107 = vsyncadd [#allocation3], 4294967280  ;;  %vm29_vm0 = vcmask 261120   ;;  %v111_v0 = vmov 0.0   ;;  %s112_s19 = smov [#allocation5]  }
  0x14   :  { %30 = vst.msk [vmem:[#allocation5] sm:$0xff] %vm29_vm0, %v111_v0  ;;  %s49_s20 = sshll.u32 %s112_s19, 4  ;;  %v58_v1 = vld [vmem:[#allocation2] ss:$0 sm:$0xff]  ;;  %s50_s20 = int_to_ptr.vmem [resolvable:$true] %s49_s20 }
  0x15   :  { %s84_s21 = scalar_lea.vmem %s50_s20, 128  ;;  %p89_p9 = scmp.lt.s32.totalorder %s50_s20, %s50_s20 }
  0x16   :  { %p85_p8 = scmp.ne.s32.totalorder %s50_s20, %s84_s21  ;;  %p90_p10 = scmp.lt.s32.totalorder %s84_s21, %s84_s21 }
  0x18   :  { %p91_p11 = por %p90_p10, %p89_p9 }
  0x1a   :  { %p92_p12 = pnand %p91_p11, %p85_p8 }
  0x1b   :  { %v32_v2 = vld [vmem:[#allocation5] sm:$0xff] }
  0x1c   :  { %v40_v3 = vadd.f32 %v58_v1, %v32_v2 }
  0x1e   :  { %42 = vst.msk [vmem:[#allocation5] sm:$0xff] %vm29_vm0, %v40_v3 }
  0x1f   :  { %95 = shalt.err (!%p92_p12)
}
  0x20   :  { %s96_s23 = scalar_lea.hbm %s148_s1, 128 }
  0x21   :  { %p97_p13 = scmp.ne.s32.totalorder %s148_s1, %s96_s23  ;;  %p100_p0 = scmp.lt.u32.totalorder %s96_s23, %s148_s1 }
  0x23   :  { %p102_p1 = pnand %p100_p0, %p97_p13 }
  0x25   :  { %105 = shalt.err (!%p102_p1)
}
  0x26   :  { %52 = dma.vmem_to_hbm [thread:$0]  %s50_s20, 128, %s148_s1, [#allocation4]  }
  0x27   :  { %108 = dma.done.wait [#allocation4], 128  }
  0x28   :  { %109 = vsyncadd [#allocation4], 4294967168 }
  0x29   :  { %56 = vsyncpa [#allocation3], 1 }
  0x2a   :  { %57 = vsyncpa [#allocation4], 1 }

</bundles_post_ra>
